<compile_context>
chip_gen: v7x
topology: tpu7x:2x2x1
jax: 0.10.0
libtpu: 0.0.40
codegen_flags: <defaults>
</compile_context>

<pallas_src>
import functools

import jax
import jax.numpy as jnp
from jax.experimental import pallas as pl
from jax.experimental.pallas import tpu as pltpu


def _make_generator_kernel(nanswers: int, n_pad: int):
    """Kernel: bf16 matmul (fp32 acc) + bias + masked log-softmax over axis=1."""

    def kernel(x_ref, w_ref, b_ref, o_ref):
        # MXU matmul on bf16 operands with fp32 accumulation.
        logits = jnp.dot(x_ref[...], w_ref[...],
                         preferred_element_type=jnp.float32)
        logits = logits + b_ref[...]  # bias is fp32, broadcast over rows

        # Mask phantom (padded) classes to -inf so max/sum ignore them.
        if n_pad > nanswers:
            col = jax.lax.broadcasted_iota(jnp.int32, logits.shape, 1)
            logits = jnp.where(col < nanswers, logits, -jnp.inf)

        # Numerically stable log-softmax over the answer axis (fp32 epilogue).
        m = jnp.max(logits, axis=1, keepdims=True)
        shifted = logits - m
        lse = jnp.log(jnp.sum(jnp.exp(shifted), axis=1, keepdims=True))
        o_ref[...] = (shifted - lse).astype(o_ref.dtype)

    return kernel


def _round_up(v: int, m: int) -> int:
    return ((v + m - 1) // m) * m


@functools.partial(jax.jit, static_argnames=("batch_tile",))
def generator_forward(x, w, b, *, batch_tile: int = 256):
    """x: (B, d_model) fp32, w: (d_model, nanswers) fp32, b: (nanswers,) fp32.

    Returns log_softmax(x @ w + b, axis=1) as fp32, shape (B, nanswers).
    """
    B, d_model = x.shape
    d_model_w, nanswers = w.shape
    assert d_model_w == d_model, "weight/d_model mismatch"

    # ---- padding for lane/sublane density and full MXU operands ----
    n_pad = _round_up(max(nanswers, 128), 128)          # lane-dense output width
    tb = min(batch_tile, _round_up(B, 8))               # batch tile, sublane-aligned
    tb = _round_up(tb, 8)
    b_pad = _round_up(B, tb)                            # whole grid covers padded batch

    # bf16 operands for MXU throughput (v6e/v7x); zero-pad to padded shapes.
    x_p = jnp.zeros((b_pad, d_model), jnp.bfloat16).at[:B, :].set(
        x.astype(jnp.bfloat16))
    w_p = jnp.zeros((d_model, n_pad), jnp.bfloat16).at[:, :nanswers].set(
        w.astype(jnp.bfloat16))
    b_p = jnp.zeros((1, n_pad), jnp.float32).at[0, :nanswers].set(
        b.astype(jnp.float32))

    grid = (b_pad // tb,)

    # ---- VMEM budget: resident W + bias, double-buffered x and out tiles ----
    vmem_needed = (d_model * n_pad * 2          # W (bf16), resident across steps
                   + n_pad * 4                  # bias (fp32)
                   + 2 * tb * d_model * 2       # x tiles, double-buffered (bf16)
                   + 2 * tb * n_pad * 4)        # out tiles, double-buffered (fp32)
    vmem_limit = min(max(2 * vmem_needed + (4 << 20), 32 << 20), 64 << 20)

    cost = pl.CostEstimate(
        flops=2 * b_pad * d_model * n_pad,
        transcendentals=b_pad * n_pad + b_pad,          # exp per logit + log per row
        bytes_accessed=(x_p.size * 2 + w_p.size * 2 + b_p.size * 4
                        + b_pad * n_pad * 4),
    )

    out_padded = pl.pallas_call(
        _make_generator_kernel(nanswers, n_pad),
        out_shape=jax.ShapeDtypeStruct((b_pad, n_pad), jnp.float32),
        grid_spec=pl.GridSpec(
            grid=grid,
            in_specs=[
                pl.BlockSpec((tb, d_model), lambda i: (i, 0)),     # x: tiled over batch
                pl.BlockSpec((d_model, n_pad), lambda i: (0, 0)),  # W: VMEM-resident
                pl.BlockSpec((1, n_pad), lambda i: (0, 0)),        # bias: VMEM-resident
            ],
            out_specs=pl.BlockSpec((tb, n_pad), lambda i: (i, 0)),
        ),
        compiler_params=pltpu.CompilerParams(
            dimension_semantics=("parallel",),   # shard batch tiles across TCs (v7x)
            vmem_limit_bytes=vmem_limit,
        ),
        cost_estimate=cost,
    )(x_p, w_p, b_p)

    # Slice off batch / class padding.
    return out_padded[:B, :nanswers]


if __name__ == "__main__":
    # Small shapes consistent with the module's forward: x is (batch, d_model).
    batch, d_model, nanswers = 2, 32, 8

    key = jax.random.PRNGKey(0)
    kx, kw, kb = jax.random.split(key, 3)

    x = jax.random.normal(kx, (batch, d_model), dtype=jnp.float32)
    # Parameters matching nn.Linear(d_model, nanswers), stored transposed for the kernel.
    w = jax.random.normal(kw, (d_model, nanswers), dtype=jnp.float32) * 0.02
    b = jax.random.normal(kb, (nanswers,), dtype=jnp.float32) * 0.02

    out = generator_forward(x, w, b)
    out = jax.block_until_ready(out)

    # Sanity check against plain-JAX fp32 reference (kernel uses bf16 matmul
    # inputs with fp32 accumulation, so allow a modest tolerance).
    ref = jax.nn.log_softmax(x @ w + b, axis=1)
    assert out.shape == (batch, nanswers)
    assert bool(jnp.all(jnp.isfinite(out))), "non-finite values in output"
    assert jnp.allclose(out, ref, atol=2e-2, rtol=2e-2), "mismatch vs reference"

    print("KERNEL_OK")
</pallas_src>

<mosaic_0001>
module attributes {stable_mosaic.version = 11 : i64} {
  func.func @kernel(%arg0: i32, %arg1: memref<8x32xbf16, #tpu.memory_space<vmem>>, %arg2: memref<32x128xbf16, #tpu.memory_space<vmem>>, %arg3: memref<1x128xf32, #tpu.memory_space<vmem>>, %arg4: memref<8x128xf32, #tpu.memory_space<vmem>>) attributes {dimension_semantics = [#tpu.dimension_semantics<parallel>], iteration_bounds = array<i64: 1>, scalar_prefetch = 0 : i64, scratch_operands = 0 : i64, tpu.core_type = #tpu.core_type<tc>, window_params = [{transform_indices = @transform_0, window_bounds = array<i64: 8, 32>}, {pipeline_mode = #tpu.pipeline_mode<synchronous>, transform_indices = @transform_1, window_bounds = array<i64: 32, 128>}, {pipeline_mode = #tpu.pipeline_mode<synchronous>, transform_indices = @transform_2, window_bounds = array<i64: 1, 128>}, {transform_indices = @transform_3, window_bounds = array<i64: 8, 128>}]} {
    %c0 = arith.constant 0 : index
    %c0_0 = arith.constant 0 : index
    %0 = vector.load %arg1[%c0, %c0_0] : memref<8x32xbf16, #tpu.memory_space<vmem>>, vector<8x32xbf16>
    %c0_1 = arith.constant 0 : index
    %c0_2 = arith.constant 0 : index
    %1 = vector.load %arg2[%c0_1, %c0_2] : memref<32x128xbf16, #tpu.memory_space<vmem>>, vector<32x128xbf16>
    %cst = arith.constant dense<0.000000e+00> : vector<8x128xf32>
    %2 = tpu.matmul %0, %1, %cst {dimension_numbers = #tpu.dot_dimension_numbers<[1], [0], [0], [1], [0, 0, 1, 1], [], []>} : vector<8x32xbf16>, vector<32x128xbf16>, vector<8x128xf32> -> vector<8x128xf32>
    %c0_3 = arith.constant 0 : index
    %c0_4 = arith.constant 0 : index
    %3 = vector.load %arg3[%c0_3, %c0_4] : memref<1x128xf32, #tpu.memory_space<vmem>>, vector<1x128xf32>
    %4 = vector.broadcast %3 : vector<1x128xf32> to vector<8x128xf32>
    %5 = arith.addf %2, %4 : vector<8x128xf32>
    %6 = tpu.iota {dimensions = array<i32: 1>} : vector<8x128xi32>
    %c8_i32 = arith.constant 8 : i32
    %7 = vector.broadcast %c8_i32 : i32 to vector<8x128xi32>
    %8 = arith.cmpi slt, %6, %7 : vector<8x128xi32>
    %cst_5 = arith.constant 0xFF800000 : f32
    %9 = vector.broadcast %cst_5 : f32 to vector<8x128xf32>
    %10 = arith.select %8, %5, %9 : vector<8x128xi1>, vector<8x128xf32>
    %cst_6 = arith.constant dense<0xFF800000> : vector<8xf32>
    %11 = vector.multi_reduction <maximumf>, %10, %cst_6 [1] : vector<8x128xf32> to vector<8xf32>
    %12 = vector.shape_cast %11 : vector<8xf32> to vector<8x1xf32>
    %13 = vector.broadcast %12 : vector<8x1xf32> to vector<8x128xf32>
    %14 = arith.subf %10, %13 : vector<8x128xf32>
    %15 = math.exp %14 : vector<8x128xf32>
    %cst_7 = arith.constant dense<0.000000e+00> : vector<8xf32>
    %16 = vector.multi_reduction <add>, %15, %cst_7 [1] : vector<8x128xf32> to vector<8xf32>
    %17 = vector.shape_cast %16 : vector<8xf32> to vector<8x1xf32>
    %18 = math.log %17 : vector<8x1xf32>
    %19 = vector.broadcast %18 : vector<8x1xf32> to vector<8x128xf32>
    %20 = arith.subf %14, %19 : vector<8x128xf32>
    %c0_8 = arith.constant 0 : index
    %c0_9 = arith.constant 0 : index
    %21 = vector.load %arg4[%c0_8, %c0_9] : memref<8x128xf32, #tpu.memory_space<vmem>>, vector<8x128xf32>
    tpu.vector_store %arg4[%c0_8, %c0_9], %20 {strides = array<i32>} : memref<8x128xf32, #tpu.memory_space<vmem>>, vector<8x128xf32>,
    return
  }
  func.func @transform_0(%arg0: i32) -> (i32, i32) {
    %c0_i32 = arith.constant 0 : i32
    %c0_i32_0 = arith.constant 0 : i32
    return %arg0, %c0_i32 : i32, i32
  }
  func.func @transform_1(%arg0: i32) -> (i32, i32) {
    %c0_i32 = arith.constant 0 : i32
    %c0_i32_0 = arith.constant 0 : i32
    %c0_i32_1 = arith.constant 0 : i32
    return %c0_i32, %c0_i32_0 : i32, i32
  }
  func.func @transform_2(%arg0: i32) -> (i32, i32) {
    %c0_i32 = arith.constant 0 : i32
    %c0_i32_0 = arith.constant 0 : i32
    %c0_i32_1 = arith.constant 0 : i32
    return %c0_i32, %c0_i32_0 : i32, i32
  }
  func.func @transform_3(%arg0: i32) -> (i32, i32) {
    %c0_i32 = arith.constant 0 : i32
    %c0_i32_0 = arith.constant 0 : i32
    return %arg0, %c0_i32 : i32, i32
  }
}

</mosaic_0001>

<bundles_post_ra>
// kernel: generator_forward.1
= control target key start
LH: loop header
LB: loop body
LE: loop exit
PB: predicated region body
PF: predicated region fallthrough
CT: control target
= control target key end

     0   :  { %v125_v0 = vmov 0.0   ;;  %vm126_vm0 = vmmov 0   ;;  %vm39_vm1 = vcmask 261120   ;;  %v83_v4 = vlaneseq  ;;  %s162_s1 = inlined_call_operand.vmem [shape: bf16[32,128], index: 1, kind: input, shape index: {}]   ;;  %s163_s0 = inlined_call_operand.vmem [shape: bf16[8,32], index: 0, kind: input, shape index: {}]   ;;  %s164_s2 = inlined_call_operand.vmem [shape: f32[1,128], index: 2, kind: input, shape index: {}]   ;;  %s165_s3 = inlined_call_operand.vmem [shape: f32[8,128], index: 3, kind: output, shape index: {}]  }
   0x1   :  { %109 = vmatprep.subr.bf16.mxu0 %v125_v0  ;;  %v119_v1 = vld [vmem:[%s162_s1] sm:$0xff]   ;;  %113 = vmatprep.mubr.msk.bf16.mxu0 %vm126_vm0, %v125_v0  ;;  %v120_v2 = vld [vmem:[%s162_s1 + $0x8] sm:$0xff]  }
   0x2   :  { %110 = vmatpush3.bf16.msra.mxu0 %v119_v1  ;;  %v15_v3 = vld [vmem:[%s163_s0] sm:$0xf]  ;;  %v84_v5 = vand.u32 127, %v83_v4 }
   0x3   :  { %111 = vmatprep.subr.bf16.mxu0 %v125_v0  ;;  %v102_v6 = vld [vmem:[%s164_s2] ss:$0 sm:$0xff] }
   0x4   :  { %vm85_vm2 = vcmp.lt.s32.totalorder %v84_v5, 8 }
   0x6   :  { %112 = vmatpush3.bf16.msra.mxu0 %v120_v2 }
   0x9   :  { %114 = vmatmul.mubr.msk.bf16.vlgmr.msra.gmra.mrb[0].mxu0 %vm39_vm1, %v15_v3 }
  0xdc   :  { %v77_v7 = vpop.f32.mrb[0].mxu0 }
  0xdd   :  { %v78_v8 = vadd.f32 %v102_v6, %v77_v7  ;;  %v115_v9 = vpop.f32.mrb[1].mxu0 }
  0xde   :  { %v80_v10 = vpop.f32.mrb[2].mxu0 }
  0xdf   :  { %v116_v11 = vpop.f32.mrb[3].mxu0  ;;  %v86_v12 = vsel %vm85_vm2, %v78_v8, -inf }
  0xe0   :  { %87 = vmax.xlane.f32.xlu0 %v86_v12 }
 0x16d   :  { %v88_v13 = vpop.xlane.xlu0 %87 }
 0x16e   :  { %v89_v14 = vsub.f32 %v86_v12, %v88_v13 }
 0x170   :  { %v90_v15 = vmul.f32 1.442695, %v89_v14 }
 0x172   :  { %121 = vpow2.f32 %v90_v15 }
 0x17c   :  { %v122_v16 = vpop.eup %121 }
 0x17d   :  { %92 = vadd.xlane.f32.xlu0 %v122_v16 }
 0x20a   :  { %v93_v17 = vpop.xlane.xlu0 %92 }
 0x20b   :  { %123 = vlog2.f32 %v93_v17 }
 0x215   :  { %v124_v18 = vpop.eup %123 }
 0x216   :  { %v95_v19 = vmul.f32 0.6931472, %v124_v18 }
 0x218   :  { %v96_v20 = vsub.f32 %v89_v14, %v95_v19 }
 0x21a   :  { %97 = vst [vmem:[%s165_s3] sm:$0xff] %v96_v20 }

</bundles_post_ra>
